<compile_context>
chip_gen: v7x
topology: tpu7x:2x2x1
jax: 0.10.0
libtpu: 0.0.40
codegen_flags: <defaults>
</compile_context>

<pallas_src>
import jax
import jax.numpy as jnp
from jax import lax
from jax.experimental import pallas as pl
from jax.experimental.pallas import tpu as pltpu


def _round_up(x, m):
    return ((x + m - 1) // m) * m


def _patch_embed_kernel(p_ref, w_ref, o_ref):
    # One M-tile of the patch matmul: (tm, K) @ (K, E_pad) -> (tm, E_pad),
    # f32 accumulation on the MXU regardless of operand dtype.
    o_ref[...] = jnp.dot(
        p_ref[...], w_ref[...], preferred_element_type=jnp.float32
    ).astype(o_ref.dtype)


def patch_embedding(x, weight, patch_size, *, compute_dtype=jnp.bfloat16,
                    out_dtype=jnp.float32, tm=512):
    """ViT patch embedding.

    x:      (B, C, H, W)  NCHW input.
    weight: (E, C, ph, pw) Conv2d weight (bias=False).
    Returns (B, num_patches, E) in `out_dtype`.
    """
    ph, pw = patch_size if isinstance(patch_size, tuple) else (patch_size, patch_size)
    B, C, H, W = x.shape
    E = weight.shape[0]
    assert H % ph == 0 and W % pw == 0
    gh, gw = H // ph, W // pw
    n_patches = gh * gw
    K = C * ph * pw
    M = B * n_patches

    # Sublane pack factor for the operand dtype (f32 -> 8 rows/vreg, bf16 -> 16).
    sub = 16 if jnp.dtype(compute_dtype) == jnp.dtype(jnp.bfloat16) else 8

    # --- glue: extract non-overlapping patches in (c, i, j) order (matches the
    # PyTorch conv-weight flatten order). allow_input_fusion below lets XLA fuse
    # this transpose into the kernel's input DMA.
    patches = x.reshape(B, C, gh, ph, gw, pw)
    patches = patches.transpose(0, 2, 4, 1, 3, 5).reshape(M, K)
    patches = patches.astype(compute_dtype)

    w_t = weight.reshape(E, K).T.astype(compute_dtype)  # (K, E)

    # Pad E up to a lane multiple (128) -> unmasked, lane-dense output stores.
    # Pad M so the M tiling divides the grid evenly.
    E_pad = _round_up(E, 128)
    tm_eff = min(_round_up(tm, sub), _round_up(M, sub))
    M_pad = _round_up(M, tm_eff)
    if E_pad != E:
        w_t = jnp.pad(w_t, ((0, 0), (0, E_pad - E)))
    if M_pad != M:
        patches = jnp.pad(patches, ((0, M_pad - M), (0, 0)))

    grid_m = M_pad // tm_eff
    bytes_in = jnp.dtype(compute_dtype).itemsize
    bytes_out = jnp.dtype(out_dtype).itemsize
    cost = pl.CostEstimate(
        flops=2 * M_pad * K * E_pad,
        transcendentals=0,
        bytes_accessed=M_pad * K * bytes_in + K * E_pad * bytes_in
        + M_pad * E_pad * bytes_out,
    )

    out = pl.pallas_call(
        _patch_embed_kernel,
        out_shape=jax.ShapeDtypeStruct((M_pad, E_pad), out_dtype),
        grid_spec=pltpu.PrefetchScalarGridSpec(
            num_scalar_prefetch=0,
            grid=(grid_m,),
            in_specs=[
                # M-tiled patch rows: double-buffered HBM->VMEM prefetch.
                pl.BlockSpec((tm_eff, K), lambda i: (i, 0)),
                # Weight: constant index map -> stays VMEM-resident across grid.
                pl.BlockSpec((K, E_pad), lambda i: (0, 0)),
            ],
            out_specs=pl.BlockSpec((tm_eff, E_pad), lambda i: (i, 0)),
        ),
        compiler_params=pltpu.CompilerParams(
            # Pure data-parallel M axis: shards tiles across v7x's 2 TensorCores.
            dimension_semantics=("parallel",),
            vmem_limit_bytes=32 * 1024 * 1024,
            # Allow XLA to fuse the patch-extraction transpose into the input DMA
            # (patches yes, weight no).
            allow_input_fusion=[True, False],
        ),
        cost_estimate=cost,
    )(patches, w_t)

    return out[:M, :E].reshape(B, n_patches, E)


if __name__ == "__main__":
    # Small deterministic example: B=2, C=4, H=W=16, patch=4, embed_dim=32.
    B, C, H, W = 2, 4, 16, 16
    patch = (4, 4)
    E = 32

    key = jax.random.PRNGKey(0)
    kx, kw = jax.random.split(key)
    x = jax.random.normal(kx, (B, C, H, W), dtype=jnp.float32)
    # Conv2d weight shape: (embed_dim, n_channels, ph, pw), bias=False.
    weight = jax.random.normal(kw, (E, C, patch[0], patch[1]), dtype=jnp.float32) * 0.02

    # Reference: strided conv (NCHW) + flatten + transpose.
    ref = lax.conv_general_dilated(
        x, weight, window_strides=patch, padding="VALID",
        dimension_numbers=("NCHW", "OIHW", "NCHW"),
    )
    ref = ref.reshape(B, E, -1).transpose(0, 2, 1)

    n_patches = (H // patch[0]) * (W // patch[1])

    # f32 operand path: tight check against the conv reference.
    out_f32 = jax.block_until_ready(
        patch_embedding(x, weight, patch, compute_dtype=jnp.float32))
    assert out_f32.shape == (B, n_patches, E), out_f32.shape
    assert jnp.allclose(out_f32, ref, atol=1e-4, rtol=1e-4), "f32 path mismatch"

    # Default bf16-operand / f32-accumulation path (MXU-native): loose check.
    out_bf16 = jax.block_until_ready(patch_embedding(x, weight, patch))
    assert out_bf16.shape == (B, n_patches, E), out_bf16.shape
    assert jnp.allclose(out_bf16, ref, atol=2e-2, rtol=2e-2), "bf16 path mismatch"

    print("KERNEL_OK")
</pallas_src>

<mosaic_0001>
module attributes {stable_mosaic.version = 11 : i64} {
  func.func @_patch_embed_kernel(%arg0: i32, %arg1: memref<32x64xf32, #tpu.memory_space<vmem>>, %arg2: memref<64x128xf32, #tpu.memory_space<vmem>>, %arg3: memref<32x128xf32, #tpu.memory_space<vmem>>) attributes {dimension_semantics = [#tpu.dimension_semantics<parallel>], iteration_bounds = array<i64: 1>, scalar_prefetch = 0 : i64, scratch_operands = 0 : i64, tpu.core_type = #tpu.core_type<tc>, window_params = [{transform_indices = @transform_0, window_bounds = array<i64: 32, 64>}, {pipeline_mode = #tpu.pipeline_mode<synchronous>, transform_indices = @transform_1, window_bounds = array<i64: 64, 128>}, {transform_indices = @transform_2, window_bounds = array<i64: 32, 128>}]} {
    %c0 = arith.constant 0 : index
    %c0_0 = arith.constant 0 : index
    %0 = vector.load %arg1[%c0, %c0_0] : memref<32x64xf32, #tpu.memory_space<vmem>>, vector<32x64xf32>
    %c0_1 = arith.constant 0 : index
    %c0_2 = arith.constant 0 : index
    %1 = vector.load %arg2[%c0_1, %c0_2] : memref<64x128xf32, #tpu.memory_space<vmem>>, vector<64x128xf32>
    %cst = arith.constant dense<0.000000e+00> : vector<32x128xf32>
    %2 = tpu.matmul %0, %1, %cst {dimension_numbers = #tpu.dot_dimension_numbers<[1], [0], [0], [1], [0, 0, 1, 1], [], []>} : vector<32x64xf32>, vector<64x128xf32>, vector<32x128xf32> -> vector<32x128xf32>
    %c0_3 = arith.constant 0 : index
    %c0_4 = arith.constant 0 : index
    %3 = vector.load %arg3[%c0_3, %c0_4] : memref<32x128xf32, #tpu.memory_space<vmem>>, vector<32x128xf32>
    tpu.vector_store %arg3[%c0_3, %c0_4], %2 {strides = array<i32>} : memref<32x128xf32, #tpu.memory_space<vmem>>, vector<32x128xf32>,
    return
  }
  func.func @transform_0(%arg0: i32) -> (i32, i32) {
    %c0_i32 = arith.constant 0 : i32
    %c0_i32_0 = arith.constant 0 : i32
    return %arg0, %c0_i32 : i32, i32
  }
  func.func @transform_1(%arg0: i32) -> (i32, i32) {
    %c0_i32 = arith.constant 0 : i32
    %c0_i32_0 = arith.constant 0 : i32
    %c0_i32_1 = arith.constant 0 : i32
    return %c0_i32, %c0_i32_0 : i32, i32
  }
  func.func @transform_2(%arg0: i32) -> (i32, i32) {
    %c0_i32 = arith.constant 0 : i32
    %c0_i32_0 = arith.constant 0 : i32
    return %arg0, %c0_i32 : i32, i32
  }
}

</mosaic_0001>

<bundles_post_ra>
// kernel: tpu_custom_call.1
= control target key start
LH: loop header
LB: loop body
LE: loop exit
PB: predicated region body
PF: predicated region fallthrough
CT: control target
= control target key end

     0   :  { %7 = vsyncpa [#allocation3], 0  ;;  %s380_s0 = inlined_call_operand.hbm [shape: f32[32,64], index: 0, kind: input, shape index: {}]   ;;  %s381_s1 = inlined_call_operand.hbm [shape: f32[64,128], index: 1, kind: input, shape index: {}]   ;;  %s382_s2 = inlined_call_operand.hbm [shape: f32[32,128], index: 2, kind: output, shape index: {}]  }
   0x1   :  { %8 = vsyncpa [#allocation6], 0 }
   0x2   :  { %9 = vsyncpa [#allocation4], 0  ;;  %s311_s9 = smov [#allocation2]   ;;  %s239_s13 = scalar_lea.hbm %s380_s0, 512 }
   0x3   :  { %s15_s10 = sshll.u32 %s311_s9, 4  ;;  %p240_p0 = scmp.ne.s32.totalorder %s380_s0, %s239_s13  ;;  %s16_s10 = int_to_ptr.vmem [resolvable:$true] %s15_s10 }
   0x4   :  { %p243_p1 = scmp.lt.u32.totalorder %s239_s13, %s380_s0 }
   0x6   :  { %p245_p2 = pnand %p243_p1, %p240_p0 }
   0x8   :  { %248 = shalt.err (!%p245_p2)
}
   0x9   :  { %s249_s18 = scalar_lea.vmem %s16_s10, 512  ;;  %p254_p4 = scmp.lt.s32.totalorder %s16_s10, %s16_s10 }
   0xa   :  { %p250_p3 = scmp.ne.s32.totalorder %s16_s10, %s249_s18  ;;  %p255_p5 = scmp.lt.s32.totalorder %s249_s18, %s249_s18 }
   0xc   :  { %p256_p6 = por %p255_p5, %p254_p4 }
   0xe   :  { %p257_p7 = pnand %p256_p6, %p250_p3 }
  0x10   :  { %260 = shalt.err (!%p257_p7)
}
  0x11   :  { %s312_s19 = smov 128   ;;  %s313_s20 = smov 8  }
  0x12   :  { %21 = dma.hbm_to_vmem [thread:$0]  %s380_s0, 512, %s16_s10, [#allocation3], %s312_s19, %s312_s19, %s313_s20  }
  0x13   :  { %s314_s23 = smov [#allocation5]   ;;  %s261_s27 = scalar_lea.hbm %s381_s1, 1024 }
  0x14   :  { %s27_s24 = sshll.u32 %s314_s23, 4  ;;  %p262_p8 = scmp.ne.s32.totalorder %s381_s1, %s261_s27  ;;  %s28_s24 = int_to_ptr.vmem [resolvable:$true] %s27_s24 }
  0x15   :  { %p265_p9 = scmp.lt.u32.totalorder %s261_s27, %s381_s1 }
  0x17   :  { %p267_p10 = pnand %p265_p9, %p262_p8 }
  0x19   :  { %270 = shalt.err (!%p267_p10)
}
  0x1a   :  { %s271_s4 = scalar_lea.vmem %s28_s24, 1024  ;;  %p276_p12 = scmp.lt.s32.totalorder %s28_s24, %s28_s24 }
  0x1b   :  { %p272_p11 = scmp.ne.s32.totalorder %s28_s24, %s271_s4  ;;  %p277_p13 = scmp.lt.s32.totalorder %s271_s4, %s271_s4 }
  0x1d   :  { %p278_p0 = por %p277_p13, %p276_p12 }
  0x1f   :  { %p279_p1 = pnand %p278_p0, %p272_p11 }
  0x21   :  { %282 = shalt.err (!%p279_p1)
}
  0x22   :  { %33 = dma.hbm_to_vmem [thread:$0]  %s381_s1, 1024, %s28_s24, [#allocation6], %s312_s19, %s312_s19, %s313_s20  }
  0x23   :  { %305 = dma.done.wait [#allocation3], 512  }
  0x24   :  { %306 = vsyncadd [#allocation3], 4294966784 }
  0x25   :  { %307 = dma.done.wait [#allocation6], 1024  }
  0x26   :  { %308 = vsyncadd [#allocation6], 4294966272  ;;  %v44_v0 = vld [vmem:[#allocation5] sm:$0xff]  ;;  %v45_v1 = vld [vmem:[#allocation5 + $0x8] sm:$0xff]  ;;  %vm52_vm0 = vcmask 523264   ;;  %s315_s1 = smov [#allocation7]  }
  0x27   :  { %v46_v2 = vld [vmem:[#allocation5 + $0x10] sm:$0xff]  ;;  %v210_v3 = vpack.c.bf16 %v45_v1, %v44_v0  ;;  %v47_v4 = vld [vmem:[#allocation5 + $0x18] sm:$0xff]  ;;  %v48_v6 = vld [vmem:[#allocation5 + $0x20] sm:$0xff]  ;;  %s159_s6 = sshll.u32 %s315_s1, 4  ;;  %s160_s6 = int_to_ptr.vmem [resolvable:$true] %s159_s6 }
  0x28   :  { %v214_v5 = vpack.c.bf16 %v47_v4, %v46_v2  ;;  %v49_v7 = vld [vmem:[#allocation5 + $0x28] sm:$0xff]  ;;  %v40_v8 = vld [vmem:[#allocation2] sm:$0xff]  ;;  %v42_v9 = vld [vmem:[#allocation2 + $0x10] sm:$0xff]  ;;  %s283_s7 = scalar_lea.vmem %s160_s6, 512  ;;  %p288_p3 = scmp.lt.s32.totalorder %s160_s6, %s160_s6 }
  0x29   :  { %211 = vmatprep.subr.bf16.mxu0 %v210_v3  ;;  %226 = vmatprep.subr.bf16.mxu1 %v210_v3  ;;  %v218_v10 = vpack.c.bf16 %v49_v7, %v48_v6  ;;  %v50_v11 = vld [vmem:[#allocation5 + $0x30] sm:$0xff]  ;;  %v51_v12 = vld [vmem:[#allocation5 + $0x38] sm:$0xff]  ;;  %v41_v14 = vld [vmem:[#allocation2 + $0x8] sm:$0xff]  ;;  %p284_p2 = scmp.ne.s32.totalorder %s160_s6, %s283_s7  ;;  %p289_p4 = scmp.lt.s32.totalorder %s283_s7, %s283_s7 }
  0x2a   :  { %213 = vmatpush3.bf16.msra.mxu0 %v210_v3  ;;  %230 = vmatpush3.bf16.msra.mxu1 %v210_v3  ;;  %v222_v13 = vpack.c.bf16 %v51_v12, %v50_v11  ;;  %v43_v15 = vld [vmem:[#allocation2 + $0x18] sm:$0xff] }
  0x2b   :  { %215 = vmatprep.subr.bf16.mxu0 %v214_v5  ;;  %227 = vmatprep.subr.bf16.mxu1 %v214_v5  ;;  %p290_p5 = por %p289_p4, %p288_p3 }
  0x2c   :  { %204 = vmatprep.mubr.msk.f32.mxu0 %vm52_vm0, %v40_v8  ;;  %207 = vmatprep.mubr.msk.f32.mxu1 %vm52_vm0, %v42_v9 }
  0x2d   :  { %p291_p6 = pnand %p290_p5, %p284_p2 }
  0x2e   :  { %217 = vmatpush3.bf16.msra.mxu0 %v214_v5  ;;  %231 = vmatpush3.bf16.msra.mxu1 %v214_v5 }
  0x2f   :  { %219 = vmatprep.subr.bf16.mxu0 %v218_v10  ;;  %228 = vmatprep.subr.bf16.mxu1 %v218_v10 }
  0x32   :  { %221 = vmatpush3.bf16.msra.mxu0 %v218_v10  ;;  %232 = vmatpush3.bf16.msra.mxu1 %v218_v10 }
  0x33   :  { %223 = vmatprep.subr.bf16.mxu0 %v222_v13  ;;  %229 = vmatprep.subr.bf16.mxu1 %v222_v13 }
  0x36   :  { %225 = vmatpush3.bf16.msra.mxu0 %v222_v13  ;;  %233 = vmatpush3.bf16.msra.mxu1 %v222_v13 }
  0x39   :  { %205 = vmatmul.mubr.msk.f32.vlgmr.msra.gmra.mrb[0].mxu0 %vm52_vm0, %v41_v14  ;;  %208 = vmatmul.mubr.msk.f32.vlgmr.msra.gmra.mrb[0].mxu1 %vm52_vm0, %v43_v15 }
 0x10c   :  { %v206_v16 = vpop.f32.mrb[0].mxu0  ;;  %v209_v17 = vpop.f32.mrb[0].mxu1 }
 0x10d   :  { %151 = vst [vmem:[#allocation7 + $0x8] sm:$0xff] %v206_v16  ;;  %153 = vst [vmem:[#allocation7 + $0x18] sm:$0xff] %v209_v17  ;;  %v131_v18 = vpop.f32.mrb[1].mxu0  ;;  %v141_v19 = vpop.f32.mrb[1].mxu1 }
 0x10e   :  { %150 = vst [vmem:[#allocation7] sm:$0xff] %v131_v18  ;;  %152 = vst [vmem:[#allocation7 + $0x10] sm:$0xff] %v141_v19 }
 0x10f   :  { %294 = shalt.err (!%p291_p6)
}
 0x110   :  { %s295_s10 = scalar_lea.hbm %s382_s2, 512 }
 0x111   :  { %p296_p7 = scmp.ne.s32.totalorder %s382_s2, %s295_s10  ;;  %p299_p8 = scmp.lt.u32.totalorder %s295_s10, %s382_s2 }
 0x113   :  { %p301_p9 = pnand %p299_p8, %p296_p7 }
 0x115   :  { %304 = shalt.err (!%p301_p9)
}
 0x116   :  { %165 = dma.vmem_to_hbm [thread:$0]  %s160_s6, 512, %s382_s2, [#allocation4], %s312_s19, %s312_s19, %s313_s20  }
 0x117   :  { %309 = dma.done.wait [#allocation4], 512  }
 0x118   :  { %310 = vsyncadd [#allocation4], 4294966784 }
 0x119   :  { %169 = vsyncpa [#allocation3], 1 }
 0x11a   :  { %170 = vsyncpa [#allocation6], 1 }
 0x11b   :  { %171 = vsyncpa [#allocation4], 1 }

</bundles_post_ra>
